<compile_context>
chip_gen: v7x
topology: tpu7x:2x2x1
jax: 0.10.0
libtpu: 0.0.40
codegen_flags: <defaults>
</compile_context>

<pallas_src>
import functools

import jax
import jax.numpy as jnp
import numpy as np
from jax.experimental import pallas as pl
from jax.experimental.pallas import tpu as pltpu

LANE = 128
_VMEM_LIMIT = 64 * 1024 * 1024  # explicit scoped-VMEM cap; actual usage is far below


def _round_up(x: int, m: int) -> int:
    return ((x + m - 1) // m) * m


def _largest_block(n: int, cap: int = 512) -> int:
    """Largest of (512, 256, 128) that divides n (n is a multiple of 128)."""
    for b in (512, 256, 128):
        if b <= cap and n % b == 0:
            return b
    return 128


def _pick_row_block(n_pad: int, cap: int = 512) -> int:
    """Row-tile size: largest divisor of n_pad from (512, 256, 128) that still gives
    >= 2 row tiles, so the 'parallel' grid axis can split across v7x's two TCs."""
    for b in (512, 256, 128):
        if b <= cap and n_pad % b == 0 and (n_pad // b >= 2 or b == 128):
            return b
    return 128


# --------------------------------------------------------------------------- #
# Small dense transform kernel:  H = X @ W   (used when f_in_pad > f_out_pad)  #
# --------------------------------------------------------------------------- #
def _matmul_kernel(x_ref, w_ref, o_ref, acc_ref):
    @pl.when(pl.program_id(2) == 0)
    def _init():
        acc_ref[...] = jnp.zeros_like(acc_ref)

    acc_ref[...] += jnp.dot(x_ref[...], w_ref[...],
                            preferred_element_type=jnp.float32)

    @pl.when(pl.program_id(2) == pl.num_programs(2) - 1)
    def _store():
        o_ref[...] = acc_ref[...].astype(o_ref.dtype)


def _dense_transform(x, w, *, block_m, out_dtype=jnp.bfloat16):
    m, k = x.shape
    _, n = w.shape
    tk = _largest_block(k)
    tn = _largest_block(n)
    flops = 2 * m * n * k
    bytes_accessed = (x.size * x.dtype.itemsize + w.size * w.dtype.itemsize
                      + m * n * jnp.dtype(out_dtype).itemsize)
    return pl.pallas_call(
        _matmul_kernel,
        out_shape=jax.ShapeDtypeStruct((m, n), out_dtype),
        grid=(m // block_m, n // tn, k // tk),
        in_specs=[pl.BlockSpec((block_m, tk), lambda i, j, l: (i, l)),
                  pl.BlockSpec((tk, tn), lambda i, j, l: (l, j))],
        out_specs=pl.BlockSpec((block_m, tn), lambda i, j, l: (i, j)),
        scratch_shapes=[pltpu.VMEM((block_m, tn), jnp.float32)],
        compiler_params=pltpu.CompilerParams(
            dimension_semantics=("parallel", "parallel", "arbitrary"),
            vmem_limit_bytes=_VMEM_LIMIT),
        cost_estimate=pl.CostEstimate(flops=flops, transcendentals=0,
                                      bytes_accessed=bytes_accessed),
    )(x, w)


# --------------------------------------------------------------------------- #
# Main GCN aggregation kernel (block-sparse over the adjacency's k blocks)     #
# --------------------------------------------------------------------------- #
def _gcn_agg_kernel(kcols_ref, knnz_ref, *refs, has_w, has_mask, apply_relu,
                    apply_l2norm, prescale_out, mask_scale):
    refs = list(refs)
    adj_ref = refs.pop(0)                            # (bm, bk) int8: (A+I) counts
    feat_ref = refs.pop(0)                           # (bk, fw) bf16: dinv-prescaled
    w_ref = refs.pop(0) if has_w else None           # (fw, fo) bf16
    bias_ref = refs.pop(0)                           # (1, fo)  f32
    dinv_ref = refs.pop(0)                           # (bm, 1)  f32
    mask_ref = refs.pop(0) if has_mask else None     # (bm, fo) bf16 0/1
    out_ref = refs.pop(0)
    acc_ref = refs.pop(0)                            # (bm, fw) f32 scratch

    i = pl.program_id(0)
    s = pl.program_id(1)

    @pl.when(s == 0)
    def _init():
        acc_ref[...] = jnp.zeros_like(acc_ref)

    # Accumulate only over this row tile's nonzero adjacency blocks.
    @pl.when(s < knnz_ref[i])
    def _accumulate():
        a = adj_ref[...].astype(jnp.float32).astype(jnp.bfloat16)  # 1B -> bf16 upcast
        acc_ref[...] += jnp.dot(a, feat_ref[...],
                                preferred_element_type=jnp.float32)

    @pl.when(s == pl.num_programs(1) - 1)
    def _finalize():
        h = acc_ref[...] * dinv_ref[...]             # left D^{-1/2} row scale
        if has_w:                                    # aggregate-first ordering:
            h = jnp.dot(h.astype(jnp.bfloat16),      # bf16 finalize matmul
                        w_ref[...], preferred_element_type=jnp.float32)
        h = h + bias_ref[...]
        if apply_relu:
            h = jnp.maximum(h, 0.0)
        if has_mask:                                 # inverted-scale dropout
            h = h * mask_ref[...].astype(jnp.float32) * mask_scale
        if apply_l2norm:                             # F.normalize(p=2, dim=1)
            ss = jnp.sum(h * h, axis=-1, keepdims=True)
            h = h * jax.lax.rsqrt(jnp.maximum(ss, 1e-24))
        if prescale_out:                             # fold next layer's dinv pre-scale
            h = h * dinv_ref[...]
        out_ref[...] = h.astype(out_ref.dtype)


def _gcn_agg_layer(adj_i8, feat, w, bias, dinv, mask, kcols, knnz, *,
                   block_m, block_k, apply_relu, apply_l2norm, prescale_out,
                   mask_scale, out_dtype):
    n_pad = adj_i8.shape[0]
    feat_w = feat.shape[1]
    f_out = bias.shape[1]
    max_nnz = kcols.shape[1]
    has_w = w is not None
    has_mask = mask is not None

    # NOTE: W / bias / dinv / mask are constant along the reduction axis; they could
    # be single-buffered (pl.Buffered(1)) to save VMEM — left default-buffered here
    # since they are tiny relative to the adjacency tiles.
    in_specs = [
        pl.BlockSpec((block_m, block_k), lambda i, s, kc, kn: (i, kc[i, s])),
        pl.BlockSpec((block_k, feat_w), lambda i, s, kc, kn: (kc[i, s], 0)),
    ]
    args = [adj_i8, feat]
    if has_w:
        in_specs.append(pl.BlockSpec((feat_w, f_out), lambda i, s, kc, kn: (0, 0)))
        args.append(w)
    in_specs += [
        pl.BlockSpec((1, f_out), lambda i, s, kc, kn: (0, 0)),
        pl.BlockSpec((block_m, 1), lambda i, s, kc, kn: (i, 0)),
    ]
    args += [bias, dinv]
    if has_mask:
        in_specs.append(pl.BlockSpec((block_m, f_out), lambda i, s, kc, kn: (i, 0)))
        args.append(mask)

    kernel = functools.partial(
        _gcn_agg_kernel, has_w=has_w, has_mask=has_mask, apply_relu=apply_relu,
        apply_l2norm=apply_l2norm, prescale_out=prescale_out, mask_scale=mask_scale)

    # Dense upper-bound cost estimate (static).
    flops = 2 * n_pad * n_pad * feat_w + (2 * n_pad * feat_w * f_out if has_w else 0)
    bytes_accessed = (adj_i8.size * 1 + feat.size * 2
                      + (w.size * 2 if has_w else 0)
                      + (mask.size * 2 if has_mask else 0)
                      + n_pad * f_out * jnp.dtype(out_dtype).itemsize)

    grid_spec = pltpu.PrefetchScalarGridSpec(
        num_scalar_prefetch=2,
        grid=(n_pad // block_m, max_nnz),
        in_specs=in_specs,
        out_specs=pl.BlockSpec((block_m, f_out), lambda i, s, kc, kn: (i, 0)),
        scratch_shapes=[pltpu.VMEM((block_m, feat_w), jnp.float32)],
    )

    return pl.pallas_call(
        kernel,
        out_shape=jax.ShapeDtypeStruct((n_pad, f_out), out_dtype),
        grid_spec=grid_spec,
        compiler_params=pltpu.CompilerParams(
            dimension_semantics=("parallel", "arbitrary"),
            vmem_limit_bytes=_VMEM_LIMIT),
        cost_estimate=pl.CostEstimate(flops=flops, transcendentals=0,
                                      bytes_accessed=bytes_accessed),
    )(kcols, knnz, *args)


# --------------------------------------------------------------------------- #
# Graph preprocessing (plain-JAX glue)                                         #
# --------------------------------------------------------------------------- #
def _build_graph_operands(edge_index, num_nodes, n_pad, block_m, block_k):
    """(A+I) as padded int8 edge counts, D^{-1/2} column vector, and per-row-tile
    compacted lists of nonzero adjacency k-blocks (scalar-prefetch schedule)."""
    idx = jnp.arange(num_nodes, dtype=edge_index.dtype)
    src = jnp.concatenate([edge_index[0], idx])               # add self loops
    dst = jnp.concatenate([edge_index[1], idx])
    # Build directly in int8 at padded size (no N^2 f32 temporary).
    adj = jnp.zeros((n_pad, n_pad), jnp.int8).at[dst, src].add(jnp.int8(1))
    # NOTE: duplicate edges accumulate counts (>1); matches PyG only for coalesced
    # edge_index (counts must stay < 128 for the int8 storage).
    deg = jnp.sum(adj, axis=1, dtype=jnp.float32)             # in-degree incl. self loop
    dinv = jnp.where(deg > 0.0, jax.lax.rsqrt(deg), 0.0).reshape(n_pad, 1)

    # Block-level sparsity map (shared by both layers: same adjacency & tiling).
    nbm, nbk = n_pad // block_m, n_pad // block_k
    blocks = adj.reshape(nbm, block_m, nbk, block_k)
    nonzero = jnp.any(blocks != 0, axis=(1, 3))               # [nbm, nbk]
    knnz = jnp.sum(nonzero, axis=1).astype(jnp.int32)         # [nbm]
    max_nnz = max(int(jnp.max(knnz)), 1)
    # Stable argsort puts nonzero block-column indices first, ascending.
    order = jnp.argsort(~nonzero, axis=1, stable=True).astype(jnp.int32)
    kcols = order[:, :max_nnz]
    # Pad unused slots with the row's last valid block index so the gated-off
    # steps re-target an already-resident block (the pipeline elides that DMA).
    last = jnp.take_along_axis(kcols, jnp.maximum(knnz - 1, 0)[:, None], axis=1)
    kcols = jnp.where(jnp.arange(max_nnz)[None, :] < knnz[:, None], kcols, last)
    return adj, dinv, kcols, knnz


# --------------------------------------------------------------------------- #
# Forward pass                                                                 #
# --------------------------------------------------------------------------- #
def two_layer_gcn_forward(x, edge_index, params, *, is_training=True,
                          should_l2_normalize_output=False, dropout_p=0.5,
                          dropout_keep_mask=None, block=512):
    """TwoLayerGCN forward. `dropout_keep_mask` is an optional [n, hid] 0/1 keep mask.
    TODO(synk): vary the dropout mask per training step / per device in real training."""
    n, in_dim = x.shape
    w1, b1, w2, b2 = params
    hid_dim, out_dim = w1.shape[1], w2.shape[1]

    # Lane-dense padded sizes; N padded only to a multiple of 128 (not block size).
    in_pad, hid_pad, out_pad = (_round_up(d, LANE) for d in (in_dim, hid_dim, out_dim))
    n_pad = _round_up(n, LANE)
    block_m = _pick_row_block(n_pad, cap=block)
    block_k = _largest_block(n_pad, cap=block)

    # Graph operands: int8 (A+I), dinv, block-sparsity schedule (shared by both layers).
    adj, dinv, kcols, knnz = _build_graph_operands(edge_index, n, n_pad,
                                                   block_m, block_k)

    # Padded, dinv-prescaled features & params (zero padding is exact).
    xs = jnp.zeros((n_pad, in_pad), jnp.float32).at[:n, :in_dim].set(x)
    xs = (xs * dinv).astype(jnp.bfloat16)                     # right D^{-1/2} pre-scale
    w1p = jnp.zeros((in_pad, hid_pad), jnp.bfloat16).at[:in_dim, :hid_dim].set(
        w1.astype(jnp.bfloat16))
    b1p = jnp.zeros((1, hid_pad), jnp.float32).at[:, :hid_dim].set(b1.reshape(1, -1))
    w2p = jnp.zeros((hid_pad, out_pad), jnp.bfloat16).at[:hid_dim, :out_dim].set(
        w2.astype(jnp.bfloat16))
    b2p = jnp.zeros((1, out_pad), jnp.float32).at[:, :out_dim].set(b2.reshape(1, -1))

    # Inverted dropout: 0/1 keep mask precomputed host-side (the TPU hardware PRNG
    # has no interpret-mode lowering); 1/(1-p) scale applied inside the kernel.
    mask = None
    mask_scale = 1.0
    if is_training and dropout_p > 0.0:
        if dropout_keep_mask is None:
            dropout_keep_mask = jax.random.bernoulli(
                jax.random.PRNGKey(0), 1.0 - dropout_p, (n, hid_dim))
        mask = jnp.zeros((n_pad, hid_pad), jnp.bfloat16).at[:n, :hid_dim].set(
            dropout_keep_mask.astype(jnp.bfloat16))
        mask_scale = 1.0 / (1.0 - dropout_p)

    # ---- layer 1: H1 = dinv ⊙ dropout(relu(S @ X @ W1 + b1)) ----
    # (trailing dinv pre-scales H1 for layer 2's factored aggregation)
    if in_pad > hid_pad:
        # transform-first: narrow accumulator / narrow feature stream (width hid_pad)
        h0 = _dense_transform(xs, w1p, block_m=block_m, out_dtype=jnp.bfloat16)
        h1 = _gcn_agg_layer(adj, h0, None, b1p, dinv, mask, kcols, knnz,
                            block_m=block_m, block_k=block_k,
                            apply_relu=True, apply_l2norm=False, prescale_out=True,
                            mask_scale=mask_scale, out_dtype=jnp.bfloat16)
    else:
        # aggregate-first: feature transform once per row tile in the finalize
        h1 = _gcn_agg_layer(adj, xs, w1p, b1p, dinv, mask, kcols, knnz,
                            block_m=block_m, block_k=block_k,
                            apply_relu=True, apply_l2norm=False, prescale_out=True,
                            mask_scale=mask_scale, out_dtype=jnp.bfloat16)

    # ---- layer 2: OUT = S @ H1 @ W2 + b2 (+ optional row-wise L2 normalize) ----
    if hid_pad > out_pad:
        h2 = _dense_transform(h1, w2p, block_m=block_m, out_dtype=jnp.bfloat16)
        out = _gcn_agg_layer(adj, h2, None, b2p, dinv, None, kcols, knnz,
                             block_m=block_m, block_k=block_k,
                             apply_relu=False,
                             apply_l2norm=should_l2_normalize_output,
                             prescale_out=False, mask_scale=1.0,
                             out_dtype=jnp.float32)
    else:
        out = _gcn_agg_layer(adj, h1, w2p, b2p, dinv, None, kcols, knnz,
                             block_m=block_m, block_k=block_k,
                             apply_relu=False,
                             apply_l2norm=should_l2_normalize_output,
                             prescale_out=False, mask_scale=1.0,
                             out_dtype=jnp.float32)

    return out[:n, :out_dim]


# --------------------------------------------------------------------------- #
# Reference (pure JAX, f32) and parameter init                                 #
# --------------------------------------------------------------------------- #
def two_layer_gcn_reference(x, edge_index, params, *, is_training,
                            should_l2_normalize_output, dropout_p,
                            dropout_keep_mask):
    n = x.shape[0]
    w1, b1, w2, b2 = params
    idx = jnp.arange(n, dtype=edge_index.dtype)
    src = jnp.concatenate([edge_index[0], idx])
    dst = jnp.concatenate([edge_index[1], idx])
    a = jnp.zeros((n, n), jnp.float32).at[dst, src].add(1.0)
    deg = a.sum(axis=1)
    dinv = jnp.where(deg > 0, jax.lax.rsqrt(deg), 0.0)
    s = dinv[:, None] * a * dinv[None, :]
    h = s @ (x @ w1) + b1.reshape(1, -1)
    h = jnp.maximum(h, 0.0)
    if is_training and dropout_p > 0.0:
        h = h * dropout_keep_mask.astype(jnp.float32) / (1.0 - dropout_p)
    out = s @ (h @ w2) + b2.reshape(1, -1)
    if should_l2_normalize_output:
        nrm = jnp.sqrt(jnp.sum(out * out, axis=1, keepdims=True))
        out = out / jnp.maximum(nrm, 1e-12)
    return out


def init_params(key, in_dim, hid_dim, out_dim):
    """Glorot-uniform weights as PyG GCNConv (stored [in, out]); biases randomized
    here (PyG inits them to zero) so the bias path is exercised by the check."""
    k1, k2, k3, k4 = jax.random.split(key, 4)

    def glorot(k, fan_in, fan_out):
        limit = (6.0 / (fan_in + fan_out)) ** 0.5
        return jax.random.uniform(k, (fan_in, fan_out), jnp.float32, -limit, limit)

    w1 = glorot(k1, in_dim, hid_dim)
    b1 = 0.1 * jax.random.normal(k3, (hid_dim,), jnp.float32)
    w2 = glorot(k2, hid_dim, out_dim)
    b2 = 0.1 * jax.random.normal(k4, (out_dim,), jnp.float32)
    return w1, b1, w2, b2


if __name__ == "__main__":
    root = jax.random.PRNGKey(0)

    def run_case(n, e, in_dim, hid_dim, out_dim, *, community_split,
                 is_training, l2norm, key):
        kx, ke, kp, km = jax.random.split(key, 4)
        x = jax.random.normal(kx, (n, in_dim), jnp.float32)
        if community_split:
            # two disjoint communities -> all-zero off-diagonal adjacency blocks
            half = n // 2
            e0 = jax.random.randint(ke, (2, e // 2), 0, half, dtype=jnp.int32)
            e1 = jax.random.randint(jax.random.fold_in(ke, 1), (2, e - e // 2),
                                    half, n, dtype=jnp.int32)
            edge_index = jnp.concatenate([e0, e1], axis=1)
        else:
            edge_index = jax.random.randint(ke, (2, e), 0, n, dtype=jnp.int32)
        params = init_params(kp, in_dim, hid_dim, out_dim)
        keep = (jax.random.bernoulli(km, 0.5, (n, hid_dim))
                if is_training else None)

        out = two_layer_gcn_forward(
            x, edge_index, params, is_training=is_training,
            should_l2_normalize_output=l2norm, dropout_p=0.5,
            dropout_keep_mask=keep)
        out = jax.block_until_ready(out)
        assert out.shape == (n, out_dim) and out.dtype == jnp.float32
        assert bool(jnp.all(jnp.isfinite(out)))

        ref = two_layer_gcn_reference(
            x, edge_index, params, is_training=is_training,
            should_l2_normalize_output=l2norm, dropout_p=0.5,
            dropout_keep_mask=keep)
        np.testing.assert_allclose(np.asarray(out), np.asarray(ref),
                                   rtol=8e-2, atol=8e-2)
        return out

    # Case 1: tiny graph — aggregate-first ordering, dropout mask, L2-normalized
    # output, single 128-block grid.
    run_case(64, 256, 32, 16, 8, community_split=False,
             is_training=True, l2norm=True, key=jax.random.fold_in(root, 0))

    # Case 2: two-community graph (zero off-diagonal adjacency blocks -> exercises
    # the scalar-prefetch block-skipping path) with a wide input feature dim ->
    # exercises transform-before-aggregate + the dense-transform matmul kernel.
    run_case(300, 1200, 200, 16, 8, community_split=True,
             is_training=False, l2norm=False, key=jax.random.fold_in(root, 1))

    print("KERNEL_OK")
</pallas_src>

<mosaic_0001>
module attributes {stable_mosaic.version = 11 : i64} {
  func.func @_gcn_agg_kernel(%arg0: i32, %arg1: i32, %arg2: memref<1x1xi32, #tpu.memory_space<smem>>, %arg3: memref<1xi32, #tpu.memory_space<smem>>, %arg4: memref<128x128xi8, #tpu.memory_space<vmem>>, %arg5: memref<128x128xbf16, #tpu.memory_space<vmem>>, %arg6: memref<128x128xbf16, #tpu.memory_space<vmem>>, %arg7: memref<1x128xf32, #tpu.memory_space<vmem>>, %arg8: memref<128x1xf32, #tpu.memory_space<vmem>>, %arg9: memref<128x128xbf16, #tpu.memory_space<vmem>>, %arg10: memref<128x128xbf16, #tpu.memory_space<vmem>>, %arg11: memref<128x128xf32, #tpu.memory_space<vmem>>) attributes {dimension_semantics = [#tpu.dimension_semantics<parallel>, #tpu.dimension_semantics<arbitrary>], iteration_bounds = array<i64: 1, 1>, scalar_prefetch = 2 : i64, scratch_operands = 1 : i64, tpu.core_type = #tpu.core_type<tc>, window_params = [{transform_indices = @transform_0, window_bounds = array<i64: 128, 128>}, {transform_indices = @transform_1, window_bounds = array<i64: 128, 128>}, {pipeline_mode = #tpu.pipeline_mode<synchronous>, transform_indices = @transform_2, window_bounds = array<i64: 128, 128>}, {pipeline_mode = #tpu.pipeline_mode<synchronous>, transform_indices = @transform_3, window_bounds = array<i64: 1, 128>}, {transform_indices = @transform_4, window_bounds = array<i64: 128, 1>}, {transform_indices = @transform_5, window_bounds = array<i64: 128, 128>}, {transform_indices = @transform_6, window_bounds = array<i64: 128, 128>}]} {
    %c0_i32 = arith.constant 0 : i32
    %0 = arith.cmpi eq, %arg1, %c0_i32 : i32
    %1 = arith.extui %0 : i1 to i32
    %c0_i32_0 = arith.constant 0 : i32
    %2 = arith.cmpi ne, %1, %c0_i32_0 : i32
    scf.if %2 {
      %cst = arith.constant 0.000000e+00 : f32
      %11 = vector.broadcast %cst : f32 to vector<128x128xf32>
      %c0 = arith.constant 0 : index
      %c0_4 = arith.constant 0 : index
      %12 = vector.load %arg11[%c0, %c0_4] : memref<128x128xf32, #tpu.memory_space<vmem>>, vector<128x128xf32>
      tpu.vector_store %arg11[%c0, %c0_4], %11 {strides = array<i32>} : memref<128x128xf32, #tpu.memory_space<vmem>>, vector<128x128xf32>,
    } else {
    }
    %3 = arith.index_cast %arg0 : i32 to index
    %4 = memref.load %arg3[%3] : memref<1xi32, #tpu.memory_space<smem>>
    %5 = arith.cmpi slt, %arg1, %4 : i32
    %6 = arith.extui %5 : i1 to i32
    %c0_i32_1 = arith.constant 0 : i32
    %7 = arith.cmpi ne, %6, %c0_i32_1 : i32
    scf.if %7 {
      %c0 = arith.constant 0 : index
      %c0_4 = arith.constant 0 : index
      %11 = vector.load %arg4[%c0, %c0_4] : memref<128x128xi8, #tpu.memory_space<vmem>>, vector<128x128xi8>
      %12 = arith.sitofp %11 : vector<128x128xi8> to vector<128x128xf32>
      %13 = arith.truncf %12 : vector<128x128xf32> to vector<128x128xbf16>
      %c0_5 = arith.constant 0 : index
      %c0_6 = arith.constant 0 : index
      %14 = vector.load %arg11[%c0_5, %c0_6] : memref<128x128xf32, #tpu.memory_space<vmem>>, vector<128x128xf32>
      %c0_7 = arith.constant 0 : index
      %c0_8 = arith.constant 0 : index
      %15 = vector.load %arg5[%c0_7, %c0_8] : memref<128x128xbf16, #tpu.memory_space<vmem>>, vector<128x128xbf16>
      %cst = arith.constant dense<0.000000e+00> : vector<128x128xf32>
      %16 = tpu.matmul %13, %15, %cst {dimension_numbers = #tpu.dot_dimension_numbers<[1], [0], [0], [1], [0, 0, 1, 1], [], []>} : vector<128x128xbf16>, vector<128x128xbf16>, vector<128x128xf32> -> vector<128x128xf32>
      %17 = arith.addf %14, %16 : vector<128x128xf32>
      %c0_9 = arith.constant 0 : index
      %c0_10 = arith.constant 0 : index
      %18 = vector.load %arg11[%c0_9, %c0_10] : memref<128x128xf32, #tpu.memory_space<vmem>>, vector<128x128xf32>
      tpu.vector_store %arg11[%c0_9, %c0_10], %17 {strides = array<i32>} : memref<128x128xf32, #tpu.memory_space<vmem>>, vector<128x128xf32>,
    } else {
    }
    %c0_i32_2 = arith.constant 0 : i32
    %8 = arith.cmpi eq, %arg1, %c0_i32_2 : i32
    %9 = arith.extui %8 : i1 to i32
    %c0_i32_3 = arith.constant 0 : i32
    %10 = arith.cmpi ne, %9, %c0_i32_3 : i32
    scf.if %10 {
      %c0 = arith.constant 0 : index
      %c0_4 = arith.constant 0 : index
      %11 = vector.load %arg11[%c0, %c0_4] : memref<128x128xf32, #tpu.memory_space<vmem>>, vector<128x128xf32>
      %c0_5 = arith.constant 0 : index
      %c0_6 = arith.constant 0 : index
      %12 = vector.load %arg8[%c0_5, %c0_6] : memref<128x1xf32, #tpu.memory_space<vmem>>, vector<128x1xf32>
      %13 = vector.broadcast %12 : vector<128x1xf32> to vector<128x128xf32>
      %14 = arith.mulf %11, %13 : vector<128x128xf32>
      %15 = arith.truncf %14 : vector<128x128xf32> to vector<128x128xbf16>
      %c0_7 = arith.constant 0 : index
      %c0_8 = arith.constant 0 : index
      %16 = vector.load %arg6[%c0_7, %c0_8] : memref<128x128xbf16, #tpu.memory_space<vmem>>, vector<128x128xbf16>
      %cst = arith.constant dense<0.000000e+00> : vector<128x128xf32>
      %17 = tpu.matmul %15, %16, %cst {dimension_numbers = #tpu.dot_dimension_numbers<[1], [0], [0], [1], [0, 0, 1, 1], [], []>} : vector<128x128xbf16>, vector<128x128xbf16>, vector<128x128xf32> -> vector<128x128xf32>
      %c0_9 = arith.constant 0 : index
      %c0_10 = arith.constant 0 : index
      %18 = vector.load %arg7[%c0_9, %c0_10] : memref<1x128xf32, #tpu.memory_space<vmem>>, vector<1x128xf32>
      %19 = vector.broadcast %18 : vector<1x128xf32> to vector<128x128xf32>
      %20 = arith.addf %17, %19 : vector<128x128xf32>
      %cst_11 = arith.constant 0.000000e+00 : f32
      %21 = vector.broadcast %cst_11 : f32 to vector<128x128xf32>
      %22 = arith.maximumf %20, %21 : vector<128x128xf32>
      %c0_12 = arith.constant 0 : index
      %c0_13 = arith.constant 0 : index
      %23 = vector.load %arg9[%c0_12, %c0_13] : memref<128x128xbf16, #tpu.memory_space<vmem>>, vector<128x128xbf16>
      %24 = arith.extf %23 : vector<128x128xbf16> to vector<128x128xf32>
      %25 = arith.mulf %22, %24 : vector<128x128xf32>
      %cst_14 = arith.constant 2.000000e+00 : f32
      %26 = vector.broadcast %cst_14 : f32 to vector<128x128xf32>
      %27 = arith.mulf %25, %26 : vector<128x128xf32>
      %c0_15 = arith.constant 0 : index
      %c0_16 = arith.constant 0 : index
      %28 = vector.load %arg8[%c0_15, %c0_16] : memref<128x1xf32, #tpu.memory_space<vmem>>, vector<128x1xf32>
      %29 = vector.broadcast %28 : vector<128x1xf32> to vector<128x128xf32>
      %30 = arith.mulf %27, %29 : vector<128x128xf32>
      %31 = arith.truncf %30 : vector<128x128xf32> to vector<128x128xbf16>
      %c0_17 = arith.constant 0 : index
      %c0_18 = arith.constant 0 : index
      %32 = vector.load %arg10[%c0_17, %c0_18] : memref<128x128xbf16, #tpu.memory_space<vmem>>, vector<128x128xbf16>
      tpu.vector_store %arg10[%c0_17, %c0_18], %31 {strides = array<i32>} : memref<128x128xbf16, #tpu.memory_space<vmem>>, vector<128x128xbf16>,
    } else {
    }
    return
  }
  func.func @transform_0(%arg0: i32, %arg1: i32, %arg2: memref<1x1xi32, #tpu.memory_space<smem>>, %arg3: memref<1xi32, #tpu.memory_space<smem>>) -> (i32, i32) {
    %0 = arith.index_cast %arg0 : i32 to index
    %1 = arith.index_cast %arg1 : i32 to index
    %2 = memref.load %arg2[%0, %1] : memref<1x1xi32, #tpu.memory_space<smem>>
    %c0_i32 = arith.constant 0 : i32
    return %arg0, %2 : i32, i32
  }
  func.func @transform_1(%arg0: i32, %arg1: i32, %arg2: memref<1x1xi32, #tpu.memory_space<smem>>, %arg3: memref<1xi32, #tpu.memory_space<smem>>) -> (i32, i32) {
    %0 = arith.index_cast %arg0 : i32 to index
    %1 = arith.index_cast %arg1 : i32 to index
    %2 = memref.load %arg2[%0, %1] : memref<1x1xi32, #tpu.memory_space<smem>>
    %c0_i32 = arith.constant 0 : i32
    %c0_i32_0 = arith.constant 0 : i32
    return %2, %c0_i32 : i32, i32
  }
  func.func @transform_2(%arg0: i32, %arg1: i32, %arg2: memref<1x1xi32, #tpu.memory_space<smem>>, %arg3: memref<1xi32, #tpu.memory_space<smem>>) -> (i32, i32) {
    %c0_i32 = arith.constant 0 : i32
    %c0_i32_0 = arith.constant 0 : i32
    %c0_i32_1 = arith.constant 0 : i32
    return %c0_i32, %c0_i32_0 : i32, i32
  }
  func.func @transform_3(%arg0: i32, %arg1: i32, %arg2: memref<1x1xi32, #tpu.memory_space<smem>>, %arg3: memref<1xi32, #tpu.memory_space<smem>>) -> (i32, i32) {
    %c0_i32 = arith.constant 0 : i32
    %c0_i32_0 = arith.constant 0 : i32
    %c0_i32_1 = arith.constant 0 : i32
    return %c0_i32, %c0_i32_0 : i32, i32
  }
  func.func @transform_4(%arg0: i32, %arg1: i32, %arg2: memref<1x1xi32, #tpu.memory_space<smem>>, %arg3: memref<1xi32, #tpu.memory_space<smem>>) -> (i32, i32) {
    %c0_i32 = arith.constant 0 : i32
    %c0_i32_0 = arith.constant 0 : i32
    return %arg0, %c0_i32 : i32, i32
  }
  func.func @transform_5(%arg0: i32, %arg1: i32, %arg2: memref<1x1xi32, #tpu.memory_space<smem>>, %arg3: memref<1xi32, #tpu.memory_space<smem>>) -> (i32, i32) {
    %c0_i32 = arith.constant 0 : i32
    %c0_i32_0 = arith.constant 0 : i32
    return %arg0, %c0_i32 : i32, i32
  }
  func.func @transform_6(%arg0: i32, %arg1: i32, %arg2: memref<1x1xi32, #tpu.memory_space<smem>>, %arg3: memref<1xi32, #tpu.memory_space<smem>>) -> (i32, i32) {
    %c0_i32 = arith.constant 0 : i32
    %c0_i32_0 = arith.constant 0 : i32
    return %arg0, %c0_i32 : i32, i32
  }
}

</mosaic_0001>

<bundles_post_ra>
// kernel: tpu_custom_call.1
= control target key start
LH: loop header
LB: loop body
LE: loop exit
PB: predicated region body
PF: predicated region fallthrough
CT: control target
= control target key end

     0   :  { %15 = vsyncpa [#allocation7], 0  ;;  %s1604_s0 = inlined_call_operand.<no memory space> [shape: s32[1,1], index: 0, kind: input, shape index: {}]   ;;  %s1605_s1 = inlined_call_operand.<no memory space> [shape: s32[1], index: 1, kind: input, shape index: {}]   ;;  %s1606_s2 = inlined_call_operand.hbm [shape: s8[128,128], index: 2, kind: input, shape index: {}]   ;;  %s1607_s3 = inlined_call_operand.hbm [shape: bf16[128,128], index: 3, kind: input, shape index: {}]   ;;  %s1608_s4 = inlined_call_operand.hbm [shape: bf16[128,128], index: 4, kind: input, shape index: {}]   ;;  %s1609_s5 = inlined_call_operand.hbm [shape: f32[1,128], index: 5, kind: input, shape index: {}]   ;;  %s1610_s6 = inlined_call_operand.hbm [shape: f32[128,1], index: 6, kind: input, shape index: {}]   ;;  %s1611_s7 = inlined_call_operand.hbm [shape: bf16[128,128], index: 7, kind: input, shape index: {}]   ;;  %s1612_s8 = inlined_call_operand.hbm [shape: bf16[128,128], index: 8, kind: output, shape index: {}]  }
   0x1   :  { %16 = vsyncpa [#allocation10], 0 }
   0x2   :  { %17 = vsyncpa [#allocation13], 0 }
   0x3   :  { %18 = vsyncpa [#allocation16], 0  ;;  %s922_s29 = sshll.u32 %s1604_s0, 10 }
   0x4   :  { %19 = vsyncpa [#allocation8], 0  ;;  %s49_s10 = scalar_lea.hbm %s1607_s3, %s922_s29  ;;  %s1352_s11 = smov [#allocation9]  }
   0x5   :  { %s50_s12 = sshll.u32 %s1352_s11, 4  ;;  %s1184_s13 = scalar_lea.hbm %s49_s10, 1024  ;;  %s51_s12 = int_to_ptr.vmem [resolvable:$true] %s50_s12 }
   0x6   :  { %p1185_p0 = scmp.ne.s32.totalorder %s49_s10, %s1184_s13  ;;  %s1186_s16 = scalar_lea.hbm %s1607_s3, 1024 }
   0x7   :  { %p1187_p1 = scmp.lt.u32.totalorder %s49_s10, %s1607_s3  ;;  %p1188_p2 = scmp.lt.u32.totalorder %s1186_s16, %s1184_s13 }
   0x8   :  { %p1190_p4 = scmp.lt.u32.totalorder %s1184_s13, %s49_s10 }
   0x9   :  { %p1189_p3 = por %p1188_p2, %p1187_p1 }
   0xb   :  { %p1191_p5 = por %p1190_p4, %p1189_p3 }
   0xd   :  { %p1192_p6 = pnand %p1191_p5, %p1185_p0 }
   0xf   :  { %1195 = shalt.err (!%p1192_p6)
}
  0x10   :  { %s1196_s19 = scalar_lea.vmem %s51_s12, 1024  ;;  %p1201_p8 = scmp.lt.s32.totalorder %s51_s12, %s51_s12 }
  0x11   :  { %p1197_p7 = scmp.ne.s32.totalorder %s51_s12, %s1196_s19  ;;  %p1202_p9 = scmp.lt.s32.totalorder %s1196_s19, %s1196_s19 }
  0x13   :  { %p1203_p10 = por %p1202_p9, %p1201_p8 }
  0x15   :  { %p1204_p11 = pnand %p1203_p10, %p1197_p7 }
  0x17   :  { %1207 = shalt.err (!%p1204_p11)
}
  0x18   :  { %s1353_s20 = smov 64   ;;  %s1354_s21 = smov 4  }
  0x19   :  { %56 = dma.hbm_to_vmem [thread:$0]  %s49_s10, 1024, %s51_s12, [#allocation10], %s1353_s20, %s1353_s20, %s1354_s21  }
  0x1a   :  { %s1355_s3 = smov [#allocation12]   ;;  %s884_s25 = sshll.u32 %s1604_s0, 7 }
  0x1b   :  { %s75_s22 = sshll.u32 %s1355_s3, 4  ;;  %s1431_s28 = scalar_lea.hbm %s1606_s2, %s884_s25  ;;  %s76_s22 = int_to_ptr.vmem [resolvable:$true] %s75_s22 }
  0x1c   :  { %s1208_s9 = scalar_lea.hbm %s1609_s5, 16 }
  0x1d   :  { %p1209_p12 = scmp.ne.s32.totalorder %s1609_s5, %s1208_s9  ;;  %p1212_p13 = scmp.lt.u32.totalorder %s1208_s9, %s1609_s5 }
  0x1f   :  { %p1214_p0 = pnand %p1212_p13, %p1209_p12 }
  0x21   :  { %1217 = shalt.err (!%p1214_p0)
}
  0x22   :  { %s1218_s0 = scalar_lea.vmem %s76_s22, 16  ;;  %s1222_s14 = scalar_lea.vmem %s76_s22, 32 }
  0x23   :  { %p1219_p1 = scmp.ne.s32.totalorder %s76_s22, %s1218_s0  ;;  %p1223_p2 = scmp.lt.s32.totalorder %s76_s22, %s76_s22 }
  0x24   :  { %p1224_p3 = scmp.lt.s32.totalorder %s1222_s14, %s1218_s0 }
  0x26   :  { %p1225_p4 = por %p1224_p3, %p1223_p2 }
  0x28   :  { %p1226_p5 = pnand %p1225_p4, %p1219_p1 }
  0x2a   :  { %1229 = shalt.err (!%p1226_p5)
}
  0x2b   :  { %78 = dma.hbm_to_vmem [thread:$0]  %s1609_s5, 16, %s76_s22, [#allocation13]  }
  0x2c   :  { %s1356_s17 = smov [#allocation6]   ;;  %s1230_s19 = scalar_lea.hbm %s1431_s28, 512 }
  0x2d   :  { %s31_s18 = sshll.u32 %s1356_s17, 4  ;;  %p1231_p6 = scmp.ne.s32.totalorder %s1431_s28, %s1230_s19  ;;  %s32_s18 = int_to_ptr.vmem [resolvable:$true] %s31_s18 }
  0x2e   :  { %s1232_s24 = scalar_lea.hbm %s1606_s2, 512  ;;  %p1233_p7 = scmp.lt.u32.totalorder %s1431_s28, %s1606_s2 }
  0x2f   :  { %p1234_p8 = scmp.lt.u32.totalorder %s1232_s24, %s1230_s19  ;;  %p1236_p10 = scmp.lt.u32.totalorder %s1230_s19, %s1431_s28 }
  0x31   :  { %p1235_p9 = por %p1234_p8, %p1233_p7 }
  0x33   :  { %p1237_p11 = por %p1236_p10, %p1235_p9 }
  0x35   :  { %p1238_p12 = pnand %p1237_p11, %p1231_p6 }
  0x37   :  { %1241 = shalt.err (!%p1238_p12)
}
  0x38   :  { %s1242_s5 = scalar_lea.vmem %s32_s18, 512  ;;  %p1247_p0 = scmp.lt.s32.totalorder %s32_s18, %s32_s18 }
  0x39   :  { %p1243_p13 = scmp.ne.s32.totalorder %s32_s18, %s1242_s5  ;;  %p1248_p1 = scmp.lt.s32.totalorder %s1242_s5, %s1242_s5 }
  0x3b   :  { %p1249_p2 = por %p1248_p1, %p1247_p0 }
  0x3d   :  { %p1250_p3 = pnand %p1249_p2, %p1243_p13 }
  0x3f   :  { %1253 = shalt.err (!%p1250_p3)
}
  0x40   :  { %s1357_s22 = smov 128   ;;  %s1358_s27 = smov 8  }
  0x41   :  { %37 = dma.hbm_to_vmem [thread:$0]  %s1431_s28, 512, %s32_s18, [#allocation7], %s1357_s22, %s1357_s22, %s1358_s27  }
  0x42   :  { %s1359_s2 = smov [#allocation11]   ;;  %s1360_s30 = smov [#allocation14]  }
  0x43   :  { %s62_s29 = sshll.u32 %s1359_s2, 4  ;;  %s84_s9 = sshll.u32 %s1360_s30, 4  ;;  %s63_s29 = int_to_ptr.vmem [resolvable:$true] %s62_s29  ;;  %s85_s9 = int_to_ptr.vmem [resolvable:$true] %s84_s9 }
  0x44   :  { %s1254_s10 = scalar_lea.hbm %s1608_s4, 1024 }
  0x45   :  { %p1255_p4 = scmp.ne.s32.totalorder %s1608_s4, %s1254_s10  ;;  %p1258_p5 = scmp.lt.u32.totalorder %s1254_s10, %s1608_s4 }
  0x47   :  { %p1260_p6 = pnand %p1258_p5, %p1255_p4 }
  0x49   :  { %1263 = shalt.err (!%p1260_p6)
}
  0x4a   :  { %s1264_s28 = scalar_lea.vmem %s63_s29, 1024  ;;  %p1269_p8 = scmp.lt.s32.totalorder %s63_s29, %s63_s29 }
  0x4b   :  { %p1265_p7 = scmp.ne.s32.totalorder %s63_s29, %s1264_s28  ;;  %p1270_p9 = scmp.lt.s32.totalorder %s1264_s28, %s1264_s28 }
  0x4d   :  { %p1271_p10 = por %p1270_p9, %p1269_p8 }
  0x4f   :  { %p1272_p11 = pnand %p1271_p10, %p1265_p7 }
  0x51   :  { %1275 = shalt.err (!%p1272_p11)
}
  0x52   :  { %68 = dma.hbm_to_vmem [thread:$0]  %s1608_s4, 1024, %s63_s29, [#allocation10], %s1353_s20, %s1353_s20, %s1354_s21  }
  0x53   :  { %s1276_s3 = scalar_lea.hbm %s1610_s6, 2048 }
  0x54   :  { %p1277_p12 = scmp.ne.s32.totalorder %s1610_s6, %s1276_s3  ;;  %p1280_p13 = scmp.lt.u32.totalorder %s1276_s3, %s1610_s6 }
  0x56   :  { %p1282_p0 = pnand %p1280_p13, %p1277_p12 }
  0x58   :  { %1285 = shalt.err (!%p1282_p0)
}
  0x59   :  { %s1286_s5 = scalar_lea.vmem %s85_s9, 2048  ;;  %p1291_p2 = scmp.lt.s32.totalorder %s85_s9, %s85_s9 }
  0x5a   :  { %p1287_p1 = scmp.ne.s32.totalorder %s85_s9, %s1286_s5  ;;  %p1292_p3 = scmp.lt.s32.totalorder %s1286_s5, %s1286_s5 }
  0x5c   :  { %p1293_p4 = por %p1292_p3, %p1291_p2 }
  0x5e   :  { %p1294_p5 = pnand %p1293_p4, %p1287_p1 }
  0x60   :  { %1297 = shalt.err (!%p1294_p5)
}
  0x61   :  { %90 = dma.hbm_to_vmem [thread:$0]  %s1610_s6, 2048, %s85_s9, [#allocation13], %s1357_s22, %s1357_s22, %s1358_s27  }
  0x62   :  { %s1361_s29 = smov [#allocation15]   ;;  %s1298_s10 = scalar_lea.hbm %s1611_s7, 1024 }
  0x63   :  { %s96_s30 = sshll.u32 %s1361_s29, 4  ;;  %p1299_p6 = scmp.ne.s32.totalorder %s1611_s7, %s1298_s10  ;;  %s97_s30 = int_to_ptr.vmem [resolvable:$true] %s96_s30 }
  0x64   :  { %p1302_p7 = scmp.lt.u32.totalorder %s1298_s10, %s1611_s7 }
  0x66   :  { %p1304_p8 = pnand %p1302_p7, %p1299_p6 }
  0x68   :  { %1307 = shalt.err (!%p1304_p8)
}
  0x69   :  { %s1308_s28 = scalar_lea.vmem %s97_s30, 1024  ;;  %p1313_p10 = scmp.lt.s32.totalorder %s97_s30, %s97_s30 }
  0x6a   :  { %p1309_p9 = scmp.ne.s32.totalorder %s97_s30, %s1308_s28  ;;  %p1314_p11 = scmp.lt.s32.totalorder %s1308_s28, %s1308_s28 }
  0x6c   :  { %p1315_p12 = por %p1314_p11, %p1313_p10 }
  0x6e   :  { %p1316_p13 = pnand %p1315_p12, %p1309_p9 }
  0x70   :  { %1319 = shalt.err (!%p1316_p13)
}
  0x71   :  { %102 = dma.hbm_to_vmem [thread:$0]  %s1611_s7, 1024, %s97_s30, [#allocation16], %s1353_s20, %s1353_s20, %s1354_s21  }
  0x72   :  { %1342 = dma.done.wait [#allocation7], 512  }
  0x73   :  { %1343 = vsyncadd [#allocation7], 4294966784 }
  0x74   :  { %1344 = dma.done.wait [#allocation10], 2048  }
  0x75   :  { %1345 = vsyncadd [#allocation10], 4294965248 }
  0x76   :  { %1346 = dma.done.wait [#allocation13], 2064  }
  0x77   :  { %1347 = vsyncadd [#allocation13], 4294965232 }
  0x78   :  { %1348 = dma.done.wait [#allocation16], 1024  }
  0x79   :  { %1349 = vsyncadd [#allocation16], 4294966272  ;;  %v1362_v0 = vmov 0.0   ;;  %p888_p0 = scmp.le.s32.totalorder %s1605_s1, 0 }
  0x7a   :  { %135 = vst [vmem:[#allocation2] sm:$0xff] %v1362_v0  ;;  %136 = vst [vmem:[#allocation2 + $0x8] sm:$0xff] %v1362_v0  ;;  %v1166_v1 = vld [vmem:[#allocation9] sm:$0xff] (!%p888_p0)   ;;  %v1167_v2 = vld [vmem:[#allocation9 + $0x8] sm:$0xff] (!%p888_p0)  }
  0x7b   :  { %137 = vst [vmem:[#allocation2 + $0x10] sm:$0xff] %v1362_v0  ;;  %138 = vst [vmem:[#allocation2 + $0x18] sm:$0xff] %v1362_v0  ;;  %155 = sbr.rel (%p888_p0) target bundleno = 381 (0x17d), region = 57  ;;  %1057 = vmatprep.subr.bf16.mxu0 (!%p888_p0), %v1166_v1  ;;  %1121 = vmatprep.subr.bf16.mxu1 (!%p888_p0), %v1166_v1  ;;  %v1168_v3 = vld [vmem:[#allocation9 + $0x10] sm:$0xff] (!%p888_p0)   ;;  %v1169_v4 = vld [vmem:[#allocation9 + $0x18] sm:$0xff] (!%p888_p0)  }
  0x7c   :  { %139 = vst [vmem:[#allocation2 + $0x20] sm:$0xff] %v1362_v0  ;;  %140 = vst [vmem:[#allocation2 + $0x28] sm:$0xff] %v1362_v0  ;;  %1058 = vmatpush3.bf16.msra.mxu0 (!%p888_p0), %v1166_v1  ;;  %1129 = vmatpush3.bf16.msra.mxu1 (!%p888_p0), %v1166_v1  ;;  %v156_v5 = vld [vmem:[#allocation6] sm:$0xff] (!%p888_p0)  ;;  %v158_v6 = vld [vmem:[#allocation6 + $0x10] sm:$0xff] (!%p888_p0) }
  0x7d   :  { %141 = vst [vmem:[#allocation2 + $0x30] sm:$0xff] %v1362_v0  ;;  %142 = vst [vmem:[#allocation2 + $0x38] sm:$0xff] %v1362_v0  ;;  %1059 = vmatprep.subr.bf16.mxu0 (!%p888_p0), %v1167_v2  ;;  %1122 = vmatprep.subr.bf16.mxu1 (!%p888_p0), %v1167_v2  ;;  %v160_v7 = vunpack.c.l.s8.bf16 (!%p888_p0), %v156_v5  ;;  %v164_v8 = vunpack.c.l.s8.bf16 (!%p888_p0), %v158_v6  ;;  %v1170_v9 = vld [vmem:[#allocation9 + $0x20] sm:$0xff] (!%p888_p0)   ;;  %v1171_v10 = vld [vmem:[#allocation9 + $0x28] sm:$0xff] (!%p888_p0)   ;;  %v161_v15 = vunpack.c.h.s8.bf16 (!%p888_p0), %v156_v5  ;;  %v165_v16 = vunpack.c.h.s8.bf16 (!%p888_p0), %v158_v6 }
  0x7e   :  { %143 = vst [vmem:[#allocation2 + $0x40] sm:$0xff] %v1362_v0  ;;  %144 = vst [vmem:[#allocation2 + $0x48] sm:$0xff] %v1362_v0  ;;  %v1172_v11 = vld [vmem:[#allocation9 + $0x30] sm:$0xff] (!%p888_p0)   ;;  %v1173_v12 = vld [vmem:[#allocation9 + $0x38] sm:$0xff] (!%p888_p0)  }
  0x7f   :  { %145 = vst [vmem:[#allocation2 + $0x50] sm:$0xff] %v1362_v0  ;;  %146 = vst [vmem:[#allocation2 + $0x58] sm:$0xff] %v1362_v0  ;;  %1073 = vmatprep.mubr.bf16.mxu0 (!%p888_p0), %v160_v7  ;;  %1081 = vmatprep.mubr.bf16.mxu1 (!%p888_p0), %v164_v8  ;;  %v157_v13 = vld [vmem:[#allocation6 + $0x8] sm:$0xff] (!%p888_p0)  ;;  %v159_v14 = vld [vmem:[#allocation6 + $0x18] sm:$0xff] (!%p888_p0) }
  0x80   :  { %147 = vst [vmem:[#allocation2 + $0x60] sm:$0xff] %v1362_v0  ;;  %148 = vst [vmem:[#allocation2 + $0x68] sm:$0xff] %v1362_v0  ;;  %1060 = vmatpush3.bf16.msra.mxu0 (!%p888_p0), %v1167_v2  ;;  %1130 = vmatpush3.bf16.msra.mxu1 (!%p888_p0), %v1167_v2  ;;  %v162_v17 = vunpack.c.l.s8.bf16 (!%p888_p0), %v157_v13  ;;  %v166_v18 = vunpack.c.l.s8.bf16 (!%p888_p0), %v159_v14  ;;  %v163_v19 = vunpack.c.h.s8.bf16 (!%p888_p0), %v157_v13  ;;  %v167_v20 = vunpack.c.h.s8.bf16 (!%p888_p0), %v159_v14 }
  0x81   :  { %149 = vst [vmem:[#allocation2 + $0x70] sm:$0xff] %v1362_v0  ;;  %150 = vst [vmem:[#allocation2 + $0x78] sm:$0xff] %v1362_v0  ;;  %1061 = vmatprep.subr.bf16.mxu0 (!%p888_p0), %v1168_v3  ;;  %1123 = vmatprep.subr.bf16.mxu1 (!%p888_p0), %v1168_v3  ;;  %v168_v23 = vld [vmem:[#allocation2] sm:$0xff] (!%p888_p0)  ;;  %v169_v33 = vld [vmem:[#allocation2 + $0x8] sm:$0xff] (!%p888_p0) }
  0x82   :  { %v170_v21 = vld [vmem:[#allocation2 + $0x10] sm:$0xff]  ;;  %v171_v27 = vld [vmem:[#allocation2 + $0x18] sm:$0xff] }
  0x83   :  { %v172_v47 = vld [vmem:[#allocation2 + $0x20] sm:$0xff]  ;;  %v173_v57 = vld [vmem:[#allocation2 + $0x28] sm:$0xff] }
  0x84   :  { %1062 = vmatpush3.bf16.msra.mxu0 %v1168_v3  ;;  %1131 = vmatpush3.bf16.msra.mxu1 %v1168_v3  ;;  %v174_v45 = vld [vmem:[#allocation2 + $0x30] sm:$0xff]  ;;  %v175_v51 = vld [vmem:[#allocation2 + $0x38] sm:$0xff] }
  0x85   :  { %1063 = vmatprep.subr.bf16.mxu0 %v1169_v4  ;;  %1124 = vmatprep.subr.bf16.mxu1 %v1169_v4  ;;  %v176_v24 = vld [vmem:[#allocation2 + $0x40] sm:$0xff]  ;;  %v177_v34 = vld [vmem:[#allocation2 + $0x48] sm:$0xff] }
  0x86   :  { %v178_v22 = vld [vmem:[#allocation2 + $0x50] sm:$0xff]  ;;  %v179_v28 = vld [vmem:[#allocation2 + $0x58] sm:$0xff] }
  0x87   :  { %v180_v48 = vld [vmem:[#allocation2 + $0x60] sm:$0xff]  ;;  %v181_v58 = vld [vmem:[#allocation2 + $0x68] sm:$0xff] }
  0x88   :  { %1064 = vmatpush3.bf16.msra.mxu0 %v1169_v4  ;;  %1132 = vmatpush3.bf16.msra.mxu1 %v1169_v4  ;;  %v182_v46 = vld [vmem:[#allocation2 + $0x70] sm:$0xff]  ;;  %v183_v52 = vld [vmem:[#allocation2 + $0x78] sm:$0xff] }
  0x89   :  { %1065 = vmatprep.subr.bf16.mxu0 %v1170_v9  ;;  %1125 = vmatprep.subr.bf16.mxu1 %v1170_v9 }
  0x8c   :  { %1066 = vmatpush3.bf16.msra.mxu0 %v1170_v9  ;;  %1133 = vmatpush3.bf16.msra.mxu1 %v1170_v9 }
  0x8d   :  { %1067 = vmatprep.subr.bf16.mxu0 %v1171_v10  ;;  %1126 = vmatprep.subr.bf16.mxu1 %v1171_v10 }
  0x90   :  { %1068 = vmatpush3.bf16.msra.mxu0 %v1171_v10  ;;  %1134 = vmatpush3.bf16.msra.mxu1 %v1171_v10 }
  0x91   :  { %1069 = vmatprep.subr.bf16.mxu0 %v1172_v11  ;;  %1127 = vmatprep.subr.bf16.mxu1 %v1172_v11 }
  0x94   :  { %1070 = vmatpush3.bf16.msra.mxu0 %v1172_v11  ;;  %1135 = vmatpush3.bf16.msra.mxu1 %v1172_v11 }
  0x95   :  { %1071 = vmatprep.subr.bf16.mxu0 %v1173_v12  ;;  %1128 = vmatprep.subr.bf16.mxu1 %v1173_v12 }
  0x98   :  { %1072 = vmatpush3.bf16.msra.mxu0 %v1173_v12  ;;  %1136 = vmatpush3.bf16.msra.mxu1 %v1173_v12 }
  0x9b   :  { %1074 = vmatmul.mubr.bf16.vlgmr.msra.gmra.mrb[0].mxu0 %v161_v15  ;;  %1082 = vmatmul.mubr.bf16.vlgmr.msra.gmra.mrb[0].mxu1 %v165_v16 }
  0x9c   :  { %1077 = vmatprep.mubr.bf16.mxu0 %v162_v17  ;;  %1085 = vmatprep.mubr.bf16.mxu1 %v166_v18 }
  0xa3   :  { %1078 = vmatmul.mubr.bf16.gmra.mrb[4].mxu0 %v163_v19  ;;  %1086 = vmatmul.mubr.bf16.gmra.mrb[4].mxu1 %v167_v20 }
 0x16e   :  { %v1075_v25 = vpop.f32.mrb[0].mxu0  ;;  %v1083_v26 = vpop.f32.mrb[0].mxu1 }
 0x16f   :  { %v347_v29 = vadd.f32 %v1075_v25, %v170_v21  ;;  %v355_v30 = vadd.f32 %v1083_v26, %v178_v22  ;;  %v282_v31 = vpop.f32.mrb[1].mxu0  ;;  %v314_v32 = vpop.f32.mrb[1].mxu1 }
 0x170   :  { %v345_v35 = vadd.f32 %v282_v31, %v168_v23  ;;  %v353_v36 = vadd.f32 %v314_v32, %v176_v24  ;;  %v1076_v37 = vpop.f32.mrb[2].mxu0  ;;  %v1084_v38 = vpop.f32.mrb[2].mxu1 }
 0x171   :  { %363 = vst [vmem:[#allocation2 + $0x10] sm:$0xff] %v347_v29  ;;  %371 = vst [vmem:[#allocation2 + $0x50] sm:$0xff] %v355_v30  ;;  %v348_v39 = vadd.f32 %v1076_v37, %v171_v27  ;;  %v356_v40 = vadd.f32 %v1084_v38, %v179_v28  ;;  %v285_v41 = vpop.f32.mrb[3].mxu0  ;;  %v317_v42 = vpop.f32.mrb[3].mxu1 }
 0x172   :  { %361 = vst [vmem:[#allocation2] sm:$0xff] %v345_v35  ;;  %369 = vst [vmem:[#allocation2 + $0x40] sm:$0xff] %v353_v36  ;;  %v346_v43 = vadd.f32 %v285_v41, %v169_v33  ;;  %v354_v44 = vadd.f32 %v317_v42, %v177_v34 }
 0x173   :  { %364 = vst [vmem:[#allocation2 + $0x18] sm:$0xff] %v348_v39  ;;  %372 = vst [vmem:[#allocation2 + $0x58] sm:$0xff] %v356_v40 }
 0x174   :  { %362 = vst [vmem:[#allocation2 + $0x8] sm:$0xff] %v346_v43  ;;  %370 = vst [vmem:[#allocation2 + $0x48] sm:$0xff] %v354_v44 }
 0x176   :  { %v1079_v49 = vpop.f32.mrb[4].mxu0  ;;  %v1087_v50 = vpop.f32.mrb[4].mxu1 }
 0x177   :  { %v351_v53 = vadd.f32 %v1079_v49, %v174_v45  ;;  %v359_v54 = vadd.f32 %v1087_v50, %v182_v46  ;;  %v298_v55 = vpop.f32.mrb[5].mxu0  ;;  %v330_v56 = vpop.f32.mrb[5].mxu1 }
 0x178   :  { %v349_v59 = vadd.f32 %v298_v55, %v172_v47  ;;  %v357_v60 = vadd.f32 %v330_v56, %v180_v48  ;;  %v1080_v61 = vpop.f32.mrb[6].mxu0  ;;  %v1088_v62 = vpop.f32.mrb[6].mxu1 }
 0x179   :  { %367 = vst [vmem:[#allocation2 + $0x30] sm:$0xff] %v351_v53  ;;  %375 = vst [vmem:[#allocation2 + $0x70] sm:$0xff] %v359_v54  ;;  %v352_v63 = vadd.f32 %v1080_v61, %v175_v51  ;;  %v360_v0 = vadd.f32 %v1088_v62, %v183_v52  ;;  %v301_v1 = vpop.f32.mrb[7].mxu0  ;;  %v333_v2 = vpop.f32.mrb[7].mxu1 }
 0x17a   :  { %365 = vst [vmem:[#allocation2 + $0x20] sm:$0xff] %v349_v59  ;;  %373 = vst [vmem:[#allocation2 + $0x60] sm:$0xff] %v357_v60  ;;  %v350_v3 = vadd.f32 %v301_v1, %v173_v57  ;;  %v358_v4 = vadd.f32 %v333_v2, %v181_v58 }
 0x17b   :  { %368 = vst [vmem:[#allocation2 + $0x38] sm:$0xff] %v352_v63  ;;  %376 = vst [vmem:[#allocation2 + $0x78] sm:$0xff] %v360_v0 }
 0x17c   :  { %366 = vst [vmem:[#allocation2 + $0x28] sm:$0xff] %v350_v3  ;;  %374 = vst [vmem:[#allocation2 + $0x68] sm:$0xff] %v358_v4 }
 0x17d PF:  { %v404_v5 = vld [vmem:[#allocation14 + $0x40] sm:$0xff]  ;;  %v1363_v7 = vmov 0   ;;  %v405_v8 = vld [vmem:[#allocation14 + $0x48] sm:$0xff]  ;;  %v399_v10 = vld [vmem:[#allocation14 + $0x18] sm:$0xff]  ;;  %s1364_s1 = smov [#allocation17]  }
 0x17e   :  { %v396_v6 = vld [vmem:[#allocation14] sm:$0xff]  ;;  %1175 = vset.pattern.permute.xlu1 %v1363_v7  ;;  %1174 = vset.pattern.permute.xlu0 %v1363_v7  ;;  %v397_v9 = vld [vmem:[#allocation14 + $0x8] sm:$0xff]  ;;  %v398_v11 = vld [vmem:[#allocation14 + $0x10] sm:$0xff]  ;;  %s865_s9 = sshll.u32 %s1364_s1, 4  ;;  %s866_s9 = int_to_ptr.vmem [resolvable:$true] %s865_s9 }
 0x17f   :  { %454 = vperm.xlu1 %1175, %v404_v5   ;;  %414 = vperm.xlu0 %1174, %v396_v6   ;;  %v1176_v12 = vld [vmem:[#allocation11] sm:$0xff]   ;;  %v1177_v13 = vld [vmem:[#allocation11 + $0x8] sm:$0xff]   ;;  %v406_v15 = vld [vmem:[#allocation14 + $0x50] sm:$0xff]  ;;  %s1320_s16 = scalar_lea.vmem %s866_s9, 1024  ;;  %p1325_p2 = scmp.lt.s32.totalorder %s866_s9, %s866_s9 }
 0x180   :  { %1089 = vmatprep.subr.bf16.mxu0 %v1176_v12  ;;  %1137 = vmatprep.subr.bf16.mxu1 %v1176_v12  ;;  %v407_v14 = vld [vmem:[#allocation14 + $0x58] sm:$0xff]  ;;  %v1178_v16 = vld [vmem:[#allocation11 + $0x10] sm:$0xff]   ;;  %v400_v18 = vld [vmem:[#allocation14 + $0x20] sm:$0xff]  ;;  %p1321_p1 = scmp.ne.s32.totalorder %s866_s9, %s1320_s16  ;;  %p1326_p3 = scmp.lt.s32.totalorder %s1320_s16, %s1320_s16 }
 0x181   :  { %1090 = vmatpush3.bf16.msra.mxu0 %v1176_v12  ;;  %1145 = vmatpush3.bf16.msra.mxu1 %v1176_v12  ;;  %v401_v17 = vld [vmem:[#allocation14 + $0x28] sm:$0xff]  ;;  %v1179_v19 = vld [vmem:[#allocation11 + $0x18] sm:$0xff]   ;;  %v408_v21 = vld [vmem:[#allocation14 + $0x60] sm:$0xff] }
 0x182   :  { %1091 = vmatprep.subr.bf16.mxu0 %v1177_v13  ;;  %1138 = vmatprep.subr.bf16.mxu1 %v1177_v13  ;;  %v409_v20 = vld [vmem:[#allocation14 + $0x68] sm:$0xff]  ;;  %v1180_v22 = vld [vmem:[#allocation11 + $0x20] sm:$0xff]   ;;  %v402_v24 = vld [vmem:[#allocation14 + $0x30] sm:$0xff]  ;;  %p1327_p4 = por %p1326_p3, %p1325_p2 }
 0x183   :  { %459 = vperm.xlu1 %1175, %v405_v8   ;;  %419 = vperm.xlu0 %1174, %v397_v9   ;;  %v403_v23 = vld [vmem:[#allocation14 + $0x38] sm:$0xff]  ;;  %v1181_v25 = vld [vmem:[#allocation11 + $0x28] sm:$0xff]   ;;  %v410_v27 = vld [vmem:[#allocation14 + $0x70] sm:$0xff] }
 0x184   :  { %v411_v26 = vld [vmem:[#allocation14 + $0x78] sm:$0xff]  ;;  %v1182_v28 = vld [vmem:[#allocation11 + $0x30] sm:$0xff]   ;;  %v389_v34 = vld [vmem:[#allocation2 + $0x48] sm:$0xff]  ;;  %p1328_p5 = pnand %p1327_p4, %p1321_p1 }
 0x185   :  { %1092 = vmatpush3.bf16.msra.mxu0 %v1177_v13  ;;  %1146 = vmatpush3.bf16.msra.mxu1 %v1177_v13  ;;  %v1183_v29 = vld [vmem:[#allocation11 + $0x38] sm:$0xff]   ;;  %v388_v32 = vld [vmem:[#allocation2 + $0x40] sm:$0xff]  ;;  %v381_v35 = vld [vmem:[#allocation2 + $0x8] sm:$0xff] }
 0x186   :  { %1093 = vmatprep.subr.bf16.mxu0 %v1178_v16  ;;  %1139 = vmatprep.subr.bf16.mxu1 %v1178_v16  ;;  %v380_v33 = vld [vmem:[#allocation2] sm:$0xff]  ;;  %v383_v42 = vld [vmem:[#allocation2 + $0x18] sm:$0xff]  ;;  %v382_v43 = vld [vmem:[#allocation2 + $0x10] sm:$0xff] }
 0x187   :  { %429 = vperm.xlu1 %1175, %v399_v10   ;;  %424 = vperm.xlu0 %1174, %v398_v11   ;;  %v391_v50 = vld [vmem:[#allocation2 + $0x58] sm:$0xff]  ;;  %v390_v51 = vld [vmem:[#allocation2 + $0x50] sm:$0xff]  ;;  %v385_v57 = vld [vmem:[#allocation2 + $0x28] sm:$0xff] }
 0x188   :  { %v384_v58 = vld [vmem:[#allocation2 + $0x20] sm:$0xff]  ;;  %v393_v0 = vld [vmem:[#allocation2 + $0x68] sm:$0xff]  ;;  %v387_v7 = vld [vmem:[#allocation2 + $0x38] sm:$0xff] }
 0x189   :  { %1094 = vmatpush3.bf16.msra.mxu0 %v1178_v16  ;;  %1147 = vmatpush3.bf16.msra.mxu1 %v1178_v16  ;;  %v392_v1 = vld [vmem:[#allocation2 + $0x60] sm:$0xff]  ;;  %v386_v8 = vld [vmem:[#allocation2 + $0x30] sm:$0xff] }
 0x18a   :  { %1095 = vmatprep.subr.bf16.mxu0 %v1179_v19  ;;  %1140 = vmatprep.subr.bf16.mxu1 %v1179_v19 }
 0x18b   :  { %469 = vperm.xlu1 %1175, %v407_v14   ;;  %464 = vperm.xlu0 %1174, %v406_v15   ;;  %v395_v14 = vld [vmem:[#allocation2 + $0x78] sm:$0xff]  ;;  %v394_v15 = vld [vmem:[#allocation2 + $0x70] sm:$0xff] }
 0x18d   :  { %1096 = vmatpush3.bf16.msra.mxu0 %v1179_v19  ;;  %1148 = vmatpush3.bf16.msra.mxu1 %v1179_v19 }
 0x18e   :  { %1097 = vmatprep.subr.bf16.mxu0 %v1180_v22  ;;  %1141 = vmatprep.subr.bf16.mxu1 %v1180_v22 }
 0x18f   :  { %439 = vperm.xlu1 %1175, %v401_v17   ;;  %434 = vperm.xlu0 %1174, %v400_v18  }
 0x191   :  { %1098 = vmatpush3.bf16.msra.mxu0 %v1180_v22  ;;  %1149 = vmatpush3.bf16.msra.mxu1 %v1180_v22  ;;  %v1555_v22 = vld [vmem:[#allocation12] ss:$0 sm:$0xff] }
 0x192   :  { %1099 = vmatprep.subr.bf16.mxu0 %v1181_v25  ;;  %1142 = vmatprep.subr.bf16.mxu1 %v1181_v25 }
 0x193   :  { %479 = vperm.xlu1 %1175, %v409_v20   ;;  %474 = vperm.xlu0 %1174, %v408_v21  }
 0x195   :  { %1100 = vmatpush3.bf16.msra.mxu0 %v1181_v25  ;;  %1150 = vmatpush3.bf16.msra.mxu1 %v1181_v25 }
 0x196   :  { %1101 = vmatprep.subr.bf16.mxu0 %v1182_v28  ;;  %1143 = vmatprep.subr.bf16.mxu1 %v1182_v28 }
 0x197   :  { %449 = vperm.xlu1 %1175, %v403_v23   ;;  %444 = vperm.xlu0 %1174, %v402_v24   ;;  %v1011_v23 = vld [vmem:[#allocation15 + $0x8] sm:$0xff]   ;;  %v940_v24 = vld [vmem:[#allocation15] sm:$0xff]  }
 0x199   :  { %1102 = vmatpush3.bf16.msra.mxu0 %v1182_v28  ;;  %1151 = vmatpush3.bf16.msra.mxu1 %v1182_v28 }
 0x19a   :  { %1103 = vmatprep.subr.bf16.mxu0 %v1183_v29  ;;  %1144 = vmatprep.subr.bf16.mxu1 %v1183_v29 }
 0x19b   :  { %489 = vperm.xlu1 %1175, %v411_v26   ;;  %484 = vperm.xlu0 %1174, %v410_v27   ;;  %v945_v27 = vunpack.c.l.bf16 %v1011_v23 }
 0x19d   :  { %1104 = vmatpush3.bf16.msra.mxu0 %v1183_v29  ;;  %1152 = vmatpush3.bf16.msra.mxu1 %v1183_v29  ;;  %v1015_v29 = vld [vmem:[#allocation15 + $0x28] sm:$0xff]  }
 0x1fe   :  { %v1507_v30 = vpop.permute.xlu1 %454  ;;  %v1509_v31 = vpop.permute.xlu0 %414 }
 0x1ff   :  { %v500_v38 = vmul.f32 %v1507_v30, %v388_v32  ;;  %v492_v39 = vmul.f32 %v1509_v31, %v380_v33  ;;  %v1014_v32 = vld [vmem:[#allocation15 + $0x20] sm:$0xff]  }
 0x202   :  { %v1511_v36 = vpop.permute.xlu1 %459  ;;  %v1513_v37 = vpop.permute.xlu0 %419 }
 0x203   :  { %v501_v40 = vmul.f32 %v1511_v36, %v389_v34  ;;  %v493_v41 = vmul.f32 %v1513_v37, %v381_v35  ;;  %v941_v34 = vunpack.c.l.bf16 %v940_v24 }
 0x205   :  { %v508_v44 = vpack.c.bf16 %v493_v41, %v492_v39  ;;  %v512_v45 = vpack.c.bf16 %v501_v40, %v500_v38  ;;  %v946_v40 = vunpack.c.h.bf16 %v1011_v23 }
 0x206   :  { %v1519_v46 = vpop.permute.xlu1 %429  ;;  %v1521_v47 = vpop.permute.xlu0 %424 }
 0x207   :  { %v495_v48 = vmul.f32 %v1519_v46, %v383_v42  ;;  %v494_v49 = vmul.f32 %v1521_v47, %v382_v43  ;;  %1105 = vmatprep.mubr.bf16.mxu0 %v508_v44  ;;  %1113 = vmatprep.mubr.bf16.mxu1 %v512_v45  ;;  %v942_v42 = vunpack.c.h.bf16 %v940_v24 }
 0x209   :  { %v509_v52 = vpack.c.bf16 %v495_v48, %v494_v49  ;;  %v961_v48 = vunpack.c.l.bf16 %v1015_v29  ;;  %v957_v49 = vunpack.c.l.bf16 %v1014_v32 }
 0x20a   :  { %v1525_v53 = vpop.permute.xlu1 %469  ;;  %v1527_v54 = vpop.permute.xlu0 %464 }
 0x20b   :  { %v503_v55 = vmul.f32 %v1525_v53, %v391_v50  ;;  %v502_v56 = vmul.f32 %v1527_v54, %v390_v51  ;;  %1106 = vmatmul.mubr.bf16.vlgmr.msra.gmra.mrb[0].mxu0 %v509_v52 }
 0x20d   :  { %v513_v59 = vpack.c.bf16 %v503_v55, %v502_v56  ;;  %v962_v56 = vunpack.c.h.bf16 %v1015_v29 }
 0x20e   :  { %v1531_v60 = vpop.permute.xlu1 %439  ;;  %v1533_v61 = vpop.permute.xlu0 %434 }
 0x20f   :  { %v497_v62 = vmul.f32 %v1531_v60, %v385_v57  ;;  %v496_v63 = vmul.f32 %v1533_v61, %v384_v58  ;;  %1114 = vmatmul.mubr.bf16.vlgmr.msra.gmra.mrb[0].mxu1 %v513_v59 }
 0x211   :  { %v510_v2 = vpack.c.bf16 %v497_v62, %v496_v63  ;;  %v958_v63 = vunpack.c.h.bf16 %v1014_v32 }
 0x212   :  { %v1537_v3 = vpop.permute.xlu1 %479  ;;  %v1539_v4 = vpop.permute.xlu0 %474 }
 0x213   :  { %v505_v5 = vmul.f32 %v1537_v3, %v393_v0  ;;  %v504_v6 = vmul.f32 %v1539_v4, %v392_v1  ;;  %1109 = vmatprep.mubr.bf16.mxu0 %v510_v2 }
 0x215   :  { %v514_v9 = vpack.c.bf16 %v505_v5, %v504_v6 }
 0x216   :  { %v1543_v10 = vpop.permute.xlu1 %449  ;;  %v1545_v11 = vpop.permute.xlu0 %444 }
 0x217   :  { %v499_v12 = vmul.f32 %v1543_v10, %v387_v7  ;;  %v498_v13 = vmul.f32 %v1545_v11, %v386_v8  ;;  %1117 = vmatprep.mubr.bf16.mxu1 %v514_v9 }
 0x219   :  { %v511_v16 = vpack.c.bf16 %v499_v12, %v498_v13 }
 0x21a   :  { %v1549_v17 = vpop.permute.xlu1 %489  ;;  %v1551_v18 = vpop.permute.xlu0 %484 }
 0x21b   :  { %v507_v19 = vmul.f32 %v1549_v17, %v395_v14  ;;  %v506_v20 = vmul.f32 %v1551_v18, %v394_v15  ;;  %1110 = vmatmul.mubr.bf16.gmra.mrb[4].mxu0 %v511_v16 }
 0x21d   :  { %v515_v21 = vpack.c.bf16 %v507_v19, %v506_v20 }
 0x21f   :  { %1118 = vmatmul.mubr.bf16.gmra.mrb[4].mxu1 %v515_v21 }
 0x2de   :  { %v1107_v25 = vpop.f32.mrb[0].mxu0 }
 0x2df   :  { %v630_v26 = vadd.f32 %v1107_v25, %v1555_v22  ;;  %v621_v28 = vpop.f32.mrb[1].mxu0 }
 0x2e0   :  { %v622_v33 = vadd.f32 %v1555_v22, %v621_v28  ;;  %v1108_v35 = vpop.f32.mrb[2].mxu0 }
 0x2e1   :  { %v686_v38 = vmax.f32 %v630_v26, 0.0  ;;  %v633_v39 = vadd.f32 %v1108_v35, %v1555_v22  ;;  %v624_v41 = vpop.f32.mrb[3].mxu0 }
 0x2e2   :  { %v684_v43 = vmax.f32 %v622_v33, 0.0  ;;  %v625_v44 = vadd.f32 %v1555_v22, %v624_v41  ;;  %v1115_v45 = vpop.f32.mrb[0].mxu1 }
 0x2e3   :  { %v734_v50 = vmul.f32 %v945_v27, %v686_v38  ;;  %v687_v51 = vmax.f32 %v633_v39, 0.0  ;;  %v662_v52 = vadd.f32 %v1115_v45, %v1555_v22  ;;  %v653_v55 = vpop.f32.mrb[1].mxu1  ;;  %v1013_v38 = vld [vmem:[#allocation15 + $0x18] sm:$0xff]  }
 0x2e4   :  { %v732_v57 = vmul.f32 %v941_v34, %v684_v43  ;;  %v685_v58 = vmax.f32 %v625_v44, 0.0  ;;  %v654_v59 = vadd.f32 %v1555_v22, %v653_v55  ;;  %v1116_v62 = vpop.f32.mrb[2].mxu1  ;;  %v953_v43 = vunpack.c.l.bf16 %v1013_v38  ;;  %v1017_v45 = vld [vmem:[#allocation15 + $0x38] sm:$0xff]  }
 0x2e5   :  { %v750_v0 = vmul.f32 2.0, %v734_v50  ;;  %v735_v1 = vmul.f32 %v946_v40, %v687_v51  ;;  %v694_v2 = vmax.f32 %v662_v52, 0.0  ;;  %v665_v5 = vadd.f32 %v1116_v62, %v1555_v22  ;;  %v656_v6 = vpop.f32.mrb[3].mxu1  ;;  %v1012_v40 = vld [vmem:[#allocation15 + $0x10] sm:$0xff]  }
 0x2e6   :  { %v748_v7 = vmul.f32 2.0, %v732_v57  ;;  %v733_v8 = vmul.f32 %v942_v42, %v685_v58  ;;  %v692_v9 = vmax.f32 %v654_v59, 0.0  ;;  %v657_v12 = vadd.f32 %v1555_v22, %v656_v6 }
 0x2e7   :  { %v751_v13 = vmul.f32 2.0, %v735_v1  ;;  %v742_v14 = vmul.f32 %v961_v48, %v694_v2  ;;  %v695_v15 = vmax.f32 %v665_v5, 0.0  ;;  %v766_v21 = vmul.f32 %v750_v0, %v1521_v47  ;;  %v1016_v48 = vld [vmem:[#allocation15 + $0x30] sm:$0xff]  }
 0x2e8   :  { %v749_v16 = vmul.f32 2.0, %v733_v8  ;;  %v740_v19 = vmul.f32 %v957_v49, %v692_v9  ;;  %v693_v20 = vmax.f32 %v657_v12, 0.0  ;;  %v764_v26 = vmul.f32 %v748_v7, %v1509_v31 }
 0x2e9   :  { %v767_v23 = vmul.f32 %v751_v13, %v1519_v46  ;;  %v758_v24 = vmul.f32 2.0, %v742_v14  ;;  %v743_v25 = vmul.f32 %v962_v56, %v695_v15  ;;  %v969_v59 = vunpack.c.l.bf16 %v1017_v45 }
 0x2ea   :  { %v765_v27 = vmul.f32 %v749_v16, %v1513_v37  ;;  %v756_v28 = vmul.f32 2.0, %v740_v19  ;;  %v741_v29 = vmul.f32 %v958_v63, %v693_v20  ;;  %v965_v62 = vunpack.c.l.bf16 %v1016_v48 }
 0x2eb   :  { %v979_v32 = vpack.c.bf16 %v767_v23, %v766_v21  ;;  %v759_v33 = vmul.f32 2.0, %v743_v25  ;;  %v774_v39 = vmul.f32 %v758_v24, %v1527_v54  ;;  %v949_v54 = vunpack.c.l.bf16 %v1012_v40 }
 0x2ec   :  { %v974_v34 = vpack.c.bf16 %v765_v27, %v764_v26  ;;  %v757_v35 = vmul.f32 2.0, %v741_v29  ;;  %v772_v46 = vmul.f32 %v756_v28, %v1507_v30  ;;  %v954_v30 = vunpack.c.h.bf16 %v1013_v38 }
 0x2ed   :  { %1018 = vst [vmem:[#allocation17 + $0x8] sm:$0xff] %v979_v32   ;;  %v775_v47 = vmul.f32 %v759_v33, %v1525_v53  ;;  %v970_v5 = vunpack.c.h.bf16 %v1017_v45  ;;  %v966_v12 = vunpack.c.h.bf16 %v1016_v48 }
 0x2ee   :  { %975 = vst [vmem:[#allocation17] sm:$0xff] %v974_v34   ;;  %v773_v31 = vmul.f32 %v757_v35, %v1511_v36  ;;  %v1111_v41 = vpop.f32.mrb[4].mxu0  ;;  %v950_v36 = vunpack.c.h.bf16 %v1012_v40 }
 0x2ef   :  { %v999_v37 = vpack.c.bf16 %v775_v47, %v774_v39  ;;  %v646_v42 = vadd.f32 %v1111_v41, %v1555_v22  ;;  %v637_v44 = vpop.f32.mrb[5].mxu0 }
 0x2f0   :  { %v994_v49 = vpack.c.bf16 %v773_v31, %v772_v46  ;;  %v638_v50 = vadd.f32 %v1555_v22, %v637_v44  ;;  %v1112_v51 = vpop.f32.mrb[6].mxu0 }
 0x2f1   :  { %1022 = vst [vmem:[#allocation17 + $0x28] sm:$0xff] %v999_v37   ;;  %v690_v53 = vmax.f32 %v646_v42, 0.0  ;;  %v649_v52 = vadd.f32 %v1112_v51, %v1555_v22  ;;  %v640_v55 = vpop.f32.mrb[7].mxu0 }
 0x2f2   :  { %1021 = vst [vmem:[#allocation17 + $0x20] sm:$0xff] %v994_v49   ;;  %v688_v56 = vmax.f32 %v638_v50, 0.0  ;;  %v641_v57 = vadd.f32 %v1555_v22, %v640_v55  ;;  %v1119_v58 = vpop.f32.mrb[4].mxu1 }
 0x2f3   :  { %v738_v63 = vmul.f32 %v953_v43, %v690_v53  ;;  %v691_v0 = vmax.f32 %v649_v52, 0.0  ;;  %v678_v1 = vadd.f32 %v1119_v58, %v1555_v22  ;;  %v669_v2 = vpop.f32.mrb[5].mxu1 }
 0x2f4   :  { %v736_v6 = vmul.f32 %v949_v54, %v688_v56  ;;  %v689_v7 = vmax.f32 %v641_v57, 0.0  ;;  %v670_v8 = vadd.f32 %v1555_v22, %v669_v2  ;;  %v1120_v9 = vpop.f32.mrb[6].mxu1 }
 0x2f5   :  { %v754_v13 = vmul.f32 2.0, %v738_v63  ;;  %v739_v14 = vmul.f32 %v954_v30, %v691_v0  ;;  %v698_v15 = vmax.f32 %v678_v1, 0.0  ;;  %v681_v16 = vadd.f32 %v1120_v9, %v1555_v22  ;;  %v672_v19 = vpop.f32.mrb[7].mxu1 }
 0x2f6   :  { %v752_v20 = vmul.f32 2.0, %v736_v6  ;;  %v737_v21 = vmul.f32 %v950_v36, %v689_v7  ;;  %v696_v23 = vmax.f32 %v670_v8, 0.0  ;;  %v673_v24 = vadd.f32 %v1555_v22, %v672_v19 }
 0x2f7   :  { %v755_v25 = vmul.f32 2.0, %v739_v14  ;;  %v746_v26 = vmul.f32 %v969_v59, %v698_v15  ;;  %v699_v27 = vmax.f32 %v681_v16, 0.0  ;;  %v770_v33 = vmul.f32 %v754_v13, %v1545_v11 }
 0x2f8   :  { %v753_v28 = vmul.f32 2.0, %v737_v21  ;;  %v744_v29 = vmul.f32 %v965_v62, %v696_v23  ;;  %v697_v32 = vmax.f32 %v673_v24, 0.0  ;;  %v768_v39 = vmul.f32 %v752_v20, %v1533_v61 }
 0x2f9   :  { %v771_v34 = vmul.f32 %v755_v25, %v1543_v10  ;;  %v762_v35 = vmul.f32 2.0, %v746_v26  ;;  %v747_v38 = vmul.f32 %v970_v5, %v699_v27 }
 0x2fa   :  { %v769_v47 = vmul.f32 %v753_v28, %v1531_v60  ;;  %v760_v40 = vmul.f32 2.0, %v744_v29  ;;  %v745_v46 = vmul.f32 %v966_v12, %v697_v32 }
 0x2fb   :  { %v989_v31 = vpack.c.bf16 %v771_v34, %v770_v33  ;;  %v763_v22 = vmul.f32 2.0, %v747_v38  ;;  %v778_v42 = vmul.f32 %v762_v35, %v1551_v18 }
 0x2fc   :  { %v984_v41 = vpack.c.bf16 %v769_v47, %v768_v39  ;;  %v761_v37 = vmul.f32 2.0, %v745_v46  ;;  %v776_v10 = vmul.f32 %v760_v40, %v1539_v4 }
 0x2fd   :  { %1020 = vst [vmem:[#allocation17 + $0x18] sm:$0xff] %v989_v31   ;;  %v779_v43 = vmul.f32 %v763_v22, %v1549_v17 }
 0x2fe   :  { %1019 = vst [vmem:[#allocation17 + $0x10] sm:$0xff] %v984_v41   ;;  %v777_v61 = vmul.f32 %v761_v37, %v1537_v3 }
 0x2ff   :  { %v1009_v11 = vpack.c.bf16 %v779_v43, %v778_v42 }
 0x300   :  { %v1004_v60 = vpack.c.bf16 %v777_v61, %v776_v10 }
 0x301   :  { %1024 = vst [vmem:[#allocation17 + $0x38] sm:$0xff] %v1009_v11  }
 0x302   :  { %1023 = vst [vmem:[#allocation17 + $0x30] sm:$0xff] %v1004_v60  }
 0x303   :  { %1331 = shalt.err (!%p1328_p5)
}
 0x304   :  { %s1332_s19 = scalar_lea.hbm %s1612_s8, 1024 }
 0x305   :  { %p1333_p6 = scmp.ne.s32.totalorder %s1612_s8, %s1332_s19  ;;  %p1336_p7 = scmp.lt.u32.totalorder %s1332_s19, %s1612_s8 }
 0x307   :  { %p1338_p8 = pnand %p1336_p7, %p1333_p6 }
 0x309   :  { %1341 = shalt.err (!%p1338_p8)
}
 0x30a   :  { %871 = dma.vmem_to_hbm [thread:$0]  %s866_s9, 1024, %s1612_s8, [#allocation8], %s1353_s20, %s1353_s20, %s1354_s21  }
 0x30b   :  { %1350 = dma.done.wait [#allocation8], 1024  }
 0x30c   :  { %1351 = vsyncadd [#allocation8], 4294966272 }
 0x30d   :  { %875 = vsyncpa [#allocation7], 1 }
 0x30e   :  { %876 = vsyncpa [#allocation10], 1 }
 0x30f   :  { %877 = vsyncpa [#allocation13], 1 }
 0x310   :  { %878 = vsyncpa [#allocation16], 1 }
 0x311   :  { %879 = vsyncpa [#allocation8], 1 }

</bundles_post_ra>
